<compile_context>
chip_gen: v7x
topology: tpu7x:2x2x1
jax: 0.10.0
libtpu: 0.0.40
codegen_flags: <defaults>
</compile_context>

<pallas_src>
import jax
import jax.numpy as jnp
from jax import lax
from jax.experimental import pallas as pl
from jax.experimental.pallas import tpu as pltpu


def _round_up(x, m):
    return ((x + m - 1) // m) * m


# ----------------------------------------------------------------------------
# Fused Pallas kernel: extras(1x1+ReLU) -> [cls | reg] heads for one row tile.
# ----------------------------------------------------------------------------
def _fused_head_kernel(feat_ids_ref, x_ref, we_ref, be_ref, wh_ref, bh_ref,
                       o_ref):
    # feat_ids_ref: scalar-prefetch (SMEM), only consumed by the index_maps.
    del feat_ids_ref
    x = x_ref[...]                                        # (TM, c_all) bf16
    # extras: 1x1 conv + bias + ReLU.  bf16 matmul inputs, f32 accumulation,
    # f32 elementwise (v5e's VPU has no bf16 arithmetic).  Padded channels stay
    # exactly zero (zero weight rows/cols and zero biases).
    h = jnp.dot(x, we_ref[0], preferred_element_type=jnp.float32) + be_ref[0]
    h = jnp.maximum(h, 0.0)                               # (TM, c_all) f32
    # classification + regression heads packed into one lane-dense matmul.
    out = jnp.dot(h.astype(wh_ref.dtype), wh_ref[0],
                  preferred_element_type=jnp.float32) + bh_ref[0]
    o_ref[...] = out.astype(o_ref.dtype)                  # (TM, 128) unmasked


# ----------------------------------------------------------------------------
# HeadModel in JAX/Pallas
# ----------------------------------------------------------------------------
class HeadModelPallas:
    """Mirrors aw_nas HeadModel.forward (norm=None branch).

    `extras` is realized as a per-feature 1x1 conv + ReLU (channel-preserving),
    `classification_headers[i]` as a 1x1 conv Cin -> num_anchors*num_classes,
    `regression_headers[i]`     as a 1x1 conv Cin -> num_anchors*4.
    """

    def __init__(self, feature_channels, num_classes=10, num_anchors=3,
                 seed=0, tile_m=128, compute_dtype=jnp.bfloat16):
        self.num_classes = num_classes
        self.num_anchors = num_anchors
        self.feature_channels = tuple(feature_channels)
        self.tile_m = tile_m
        self.compute_dtype = compute_dtype
        key = jax.random.PRNGKey(seed)

        def init_conv(key, cin, cout, scale=0.05):
            kw, kb = jax.random.split(key)
            w = scale * jax.random.normal(kw, (cin, cout), jnp.float32)
            b = scale * jax.random.normal(kb, (cout,), jnp.float32)
            return w, b

        # Unpacked per-head f32 params (also used by the pure-JAX reference).
        self.extras_params = []
        self.cls_params = []
        self.reg_params = []
        for cin in feature_channels:
            key, k1, k2, k3 = jax.random.split(key, 4)
            self.extras_params.append(init_conv(k1, cin, cin))
            self.cls_params.append(init_conv(k2, cin, num_anchors * num_classes))
            self.reg_params.append(init_conv(k3, cin, num_anchors * 4))

        # ---- pack weights once --------------------------------------------
        # Channels are padded only to a small common c_all (sublane multiple),
        # NOT to 128; only the packed [cls|reg] output channels are padded to a
        # lane-dense 128.
        # TODO(synk): for real detection backbones with widely mixed channel
        # counts (256..1024), pack weights per-feature at their own padded K
        # (or add a K grid axis with per-feature extents from scalar prefetch)
        # instead of padding every feature to max(C_i).
        self.n_cls = num_anchors * num_classes
        self.n_reg = num_anchors * 4
        self.n_head = self.n_cls + self.n_reg
        self.c_all = _round_up(max(feature_channels), 8)
        self.hpad = _round_up(self.n_head, 128)
        assert max(feature_channels) <= self.c_all

        nf = len(feature_channels)
        we_all = jnp.zeros((nf, self.c_all, self.c_all), jnp.float32)
        be_all = jnp.zeros((nf, 1, self.c_all), jnp.float32)
        wh_all = jnp.zeros((nf, self.c_all, self.hpad), jnp.float32)
        bh_all = jnp.zeros((nf, 1, self.hpad), jnp.float32)
        for i, cin in enumerate(feature_channels):
            we, be = self.extras_params[i]
            wc, bc = self.cls_params[i]
            wr, br = self.reg_params[i]
            we_all = we_all.at[i, :cin, :cin].set(we)
            be_all = be_all.at[i, 0, :cin].set(be)
            wh_all = wh_all.at[i, :cin, :self.n_cls].set(wc)
            wh_all = wh_all.at[i, :cin, self.n_cls:self.n_head].set(wr)
            bh_all = bh_all.at[i, 0, :self.n_cls].set(bc)
            bh_all = bh_all.at[i, 0, self.n_cls:self.n_head].set(br)
        # Matmul weights in bf16 (halves HBM reads); biases stay f32.
        self.we_all = we_all.astype(compute_dtype)
        self.wh_all = wh_all.astype(compute_dtype)
        self.be_all = be_all
        self.bh_all = bh_all

    def __call__(self, features_nchw):
        assert isinstance(features_nchw, (list, tuple)), \
            "features must be a series of feature."
        tm = self.tile_m
        batch_size = features_nchw[0].shape[0]

        # Compact prep: NCHW -> (M, C) rows in (n, h, w)-major order, cast to
        # the compute dtype, pad rows to a multiple of tm and channels only to
        # c_all (<=8 here). All of this touches only the few-KB compact
        # activations — never a lane-padded slab.  Tiles of each feature are
        # contiguous in the grid by construction.
        # TODO(synk): the remaining compact transpose/pad/concat could be
        # folded into the kernel with pl.ANY HBM refs + manual strided DMA
        # gather (per-channel strided copies into a zeroed VMEM tile).
        x_parts, feat_ids, row_meta = [], [], []
        for fi, f in enumerate(features_nchw):
            n, c, h, w = f.shape
            assert n == batch_size and c <= self.c_all
            m = n * h * w
            x2 = jnp.transpose(f, (0, 2, 3, 1)).reshape(m, c)
            x2 = x2.astype(self.compute_dtype)
            m_pad = _round_up(m, tm)
            x2 = jnp.pad(x2, ((0, m_pad - m), (0, self.c_all - c)))
            x_parts.append(x2)
            feat_ids += [fi] * (m_pad // tm)
            row_meta.append((m, m_pad))
        x_all = jnp.concatenate(x_parts, axis=0)
        feat_ids = jnp.asarray(feat_ids, jnp.int32)
        num_tiles = int(feat_ids.shape[0])
        m_total = int(x_all.shape[0])

        # Advisory cost estimate: real FLOPs and real HBM bytes.
        nf = len(self.feature_channels)
        isz = jnp.dtype(self.compute_dtype).itemsize
        cost = pl.CostEstimate(
            flops=2 * m_total * self.c_all * (self.c_all + self.hpad),
            transcendentals=0,
            bytes_accessed=(m_total * self.c_all * isz                 # x
                            + nf * self.c_all * (self.c_all + self.hpad) * isz
                            + nf * (self.c_all + self.hpad) * 4        # biases
                            + m_total * self.hpad * 4))                # out

        out_all = pl.pallas_call(
            _fused_head_kernel,
            out_shape=jax.ShapeDtypeStruct((m_total, self.hpad), jnp.float32),
            grid_spec=pltpu.PrefetchScalarGridSpec(
                num_scalar_prefetch=1,
                grid=(num_tiles,),
                in_specs=[
                    # activations: one compact (tm, c_all) tile per step
                    pl.BlockSpec((tm, self.c_all), lambda i, fids: (i, 0)),
                    # per-feature packed weights, selected via scalar prefetch
                    pl.BlockSpec((1, self.c_all, self.c_all),
                                 lambda i, fids: (fids[i], 0, 0)),
                    pl.BlockSpec((1, 1, self.c_all),
                                 lambda i, fids: (fids[i], 0, 0)),
                    pl.BlockSpec((1, self.c_all, self.hpad),
                                 lambda i, fids: (fids[i], 0, 0)),
                    pl.BlockSpec((1, 1, self.hpad),
                                 lambda i, fids: (fids[i], 0, 0)),
                ],
                out_specs=pl.BlockSpec((tm, self.hpad),
                                       lambda i, fids: (i, 0)),
            ),
            compiler_params=pltpu.CompilerParams(
                dimension_semantics=("parallel",)),
            cost_estimate=cost,
        )(feat_ids, x_all, self.we_all, self.be_all, self.wh_all, self.bh_all)

        # Epilogue: per feature, two column views + reshape, one concat each.
        # Rows are (n, h, w)-major, so reshape(batch, -1) matches
        # permute(0, 2, 3, 1).contiguous().view(bs, -1) exactly.
        conf_parts, loc_parts = [], []
        row = 0
        for (m, m_pad) in row_meta:
            blk = out_all[row:row + m]
            conf_parts.append(blk[:, :self.n_cls].reshape(batch_size, -1))
            loc_parts.append(
                blk[:, self.n_cls:self.n_head].reshape(batch_size, -1))
            row += m_pad
        confidences = jnp.concatenate(conf_parts, axis=1).reshape(
            batch_size, -1, self.num_classes)
        locations = jnp.concatenate(loc_parts, axis=1).reshape(
            batch_size, -1, 4)
        return confidences, locations


# ----------------------------------------------------------------------------
# Pure-JAX reference (correctness check)
# ----------------------------------------------------------------------------
def _reference(model, features_nchw, quantize=False):
    """quantize=True replays the kernel's intentional bf16-input rounding so a
    tight tolerance can be used; quantize=False is the pure-f32 spec."""
    q = ((lambda v: v.astype(jnp.bfloat16).astype(jnp.float32))
         if quantize else (lambda v: v))
    hi = lax.Precision.HIGHEST
    feats = [jnp.transpose(f, (0, 2, 3, 1)) for f in features_nchw]
    bs = feats[0].shape[0]
    conf, loc = [], []
    for f, (we, be), (wc, bc), (wr, br) in zip(
            feats, model.extras_params, model.cls_params, model.reg_params):
        h = jax.nn.relu(
            jnp.einsum("nhwc,cd->nhwd", q(f), q(we), precision=hi) + be)
        h = q(h)
        conf.append(jnp.einsum("nhwc,cd->nhwd", h, q(wc), precision=hi) + bc)
        loc.append(jnp.einsum("nhwc,cd->nhwd", h, q(wr), precision=hi) + br)
    conf = jnp.concatenate([t.reshape(bs, -1) for t in conf], 1).reshape(
        bs, -1, model.num_classes)
    loc = jnp.concatenate([t.reshape(bs, -1) for t in loc], 1).reshape(
        bs, -1, 4)
    return conf, loc


if __name__ == "__main__":
    key = jax.random.PRNGKey(0)
    k1, k2 = jax.random.split(key)

    # Two SSD-style feature maps (NCHW, as PyTorch would produce them).
    f0 = jax.random.normal(k1, (2, 4, 16, 16), jnp.float32)   # N=2, C=4, 16x16
    f1 = jax.random.normal(k2, (2, 8, 8, 8), jnp.float32)     # N=2, C=8, 8x8
    features = [f0, f1]

    model = HeadModelPallas(feature_channels=[4, 8], num_classes=10,
                            num_anchors=3, seed=0)

    confidences, locations = model(features)
    jax.block_until_ready((confidences, locations))

    # shape check: anchors = (16*16 + 8*8) * 3 = 960
    assert confidences.shape == (2, 960, 10), confidences.shape
    assert locations.shape == (2, 960, 4), locations.shape

    # Tight check against a reference that replays the bf16 input rounding.
    qconf, qloc = _reference(model, features, quantize=True)
    assert jnp.allclose(confidences, qconf, atol=1e-3, rtol=1e-3)
    assert jnp.allclose(locations, qloc, atol=1e-3, rtol=1e-3)

    # Loose sanity check against the pure-f32 spec (bf16 matmul inputs).
    rconf, rloc = _reference(model, features, quantize=False)
    assert jnp.allclose(confidences, rconf, atol=5e-2, rtol=5e-2)
    assert jnp.allclose(locations, rloc, atol=5e-2, rtol=5e-2)

    print("KERNEL_OK")
</pallas_src>

<mosaic_0001>
module attributes {stable_mosaic.version = 11 : i64} {
  func.func @_fused_head_kernel(%arg0: i32, %arg1: memref<5xi32, #tpu.memory_space<smem>>, %arg2: memref<128x8xbf16, #tpu.memory_space<vmem>>, %arg3: memref<1x8x8xbf16, #tpu.memory_space<vmem>>, %arg4: memref<1x1x8xf32, #tpu.memory_space<vmem>>, %arg5: memref<1x8x128xbf16, #tpu.memory_space<vmem>>, %arg6: memref<1x1x128xf32, #tpu.memory_space<vmem>>, %arg7: memref<128x128xf32, #tpu.memory_space<vmem>>) attributes {dimension_semantics = [#tpu.dimension_semantics<parallel>], iteration_bounds = array<i64: 5>, scalar_prefetch = 1 : i64, scratch_operands = 0 : i64, tpu.core_type = #tpu.core_type<tc>, window_params = [{transform_indices = @transform_0, window_bounds = array<i64: 128, 8>}, {transform_indices = @transform_1, window_bounds = array<i64: 1, 8, 8>}, {transform_indices = @transform_2, window_bounds = array<i64: 1, 1, 8>}, {transform_indices = @transform_3, window_bounds = array<i64: 1, 8, 128>}, {transform_indices = @transform_4, window_bounds = array<i64: 1, 1, 128>}, {transform_indices = @transform_5, window_bounds = array<i64: 128, 128>}]} {
    %c0 = arith.constant 0 : index
    %c0_0 = arith.constant 0 : index
    %0 = vector.load %arg2[%c0, %c0_0] : memref<128x8xbf16, #tpu.memory_space<vmem>>, vector<128x8xbf16>
    %c0_1 = arith.constant 0 : index
    %c0_2 = arith.constant 0 : index
    %c0_3 = arith.constant 0 : index
    %1 = vector.load %arg3[%c0_1, %c0_2, %c0_3] : memref<1x8x8xbf16, #tpu.memory_space<vmem>>, vector<1x8x8xbf16>
    %2 = vector.shape_cast %1 : vector<1x8x8xbf16> to vector<8x8xbf16>
    %cst = arith.constant dense<0.000000e+00> : vector<128x8xf32>
    %3 = tpu.matmul %0, %2, %cst {dimension_numbers = #tpu.dot_dimension_numbers<[1], [0], [0], [1], [0, 0, 1, 1], [], []>} : vector<128x8xbf16>, vector<8x8xbf16>, vector<128x8xf32> -> vector<128x8xf32>
    %c0_4 = arith.constant 0 : index
    %c0_5 = arith.constant 0 : index
    %c0_6 = arith.constant 0 : index
    %4 = vector.load %arg4[%c0_4, %c0_5, %c0_6] : memref<1x1x8xf32, #tpu.memory_space<vmem>>, vector<1x1x8xf32>
    %5 = vector.shape_cast %4 : vector<1x1x8xf32> to vector<1x8xf32>
    %6 = vector.broadcast %5 : vector<1x8xf32> to vector<128x8xf32>
    %7 = arith.addf %3, %6 : vector<128x8xf32>
    %cst_7 = arith.constant 0.000000e+00 : f32
    %8 = vector.broadcast %cst_7 : f32 to vector<128x8xf32>
    %9 = arith.maximumf %7, %8 : vector<128x8xf32>
    %10 = arith.truncf %9 : vector<128x8xf32> to vector<128x8xbf16>
    %c0_8 = arith.constant 0 : index
    %c0_9 = arith.constant 0 : index
    %c0_10 = arith.constant 0 : index
    %11 = vector.load %arg5[%c0_8, %c0_9, %c0_10] : memref<1x8x128xbf16, #tpu.memory_space<vmem>>, vector<1x8x128xbf16>
    %12 = vector.shape_cast %11 : vector<1x8x128xbf16> to vector<8x128xbf16>
    %cst_11 = arith.constant dense<0.000000e+00> : vector<128x128xf32>
    %13 = tpu.matmul %10, %12, %cst_11 {dimension_numbers = #tpu.dot_dimension_numbers<[1], [0], [0], [1], [0, 0, 1, 1], [], []>} : vector<128x8xbf16>, vector<8x128xbf16>, vector<128x128xf32> -> vector<128x128xf32>
    %c0_12 = arith.constant 0 : index
    %c0_13 = arith.constant 0 : index
    %c0_14 = arith.constant 0 : index
    %14 = vector.load %arg6[%c0_12, %c0_13, %c0_14] : memref<1x1x128xf32, #tpu.memory_space<vmem>>, vector<1x1x128xf32>
    %15 = vector.shape_cast %14 : vector<1x1x128xf32> to vector<1x128xf32>
    %16 = vector.broadcast %15 : vector<1x128xf32> to vector<128x128xf32>
    %17 = arith.addf %13, %16 : vector<128x128xf32>
    %c0_15 = arith.constant 0 : index
    %c0_16 = arith.constant 0 : index
    %18 = vector.load %arg7[%c0_15, %c0_16] : memref<128x128xf32, #tpu.memory_space<vmem>>, vector<128x128xf32>
    tpu.vector_store %arg7[%c0_15, %c0_16], %17 {strides = array<i32>} : memref<128x128xf32, #tpu.memory_space<vmem>>, vector<128x128xf32>,
    return
  }
  func.func @transform_0(%arg0: i32, %arg1: memref<5xi32, #tpu.memory_space<smem>>) -> (i32, i32) {
    %c0_i32 = arith.constant 0 : i32
    %c0_i32_0 = arith.constant 0 : i32
    return %arg0, %c0_i32 : i32, i32
  }
  func.func @transform_1(%arg0: i32, %arg1: memref<5xi32, #tpu.memory_space<smem>>) -> (i32, i32, i32) {
    %0 = arith.index_cast %arg0 : i32 to index
    %1 = memref.load %arg1[%0] : memref<5xi32, #tpu.memory_space<smem>>
    %c0_i32 = arith.constant 0 : i32
    %c0_i32_0 = arith.constant 0 : i32
    %c0_i32_1 = arith.constant 0 : i32
    return %1, %c0_i32, %c0_i32_0 : i32, i32, i32
  }
  func.func @transform_2(%arg0: i32, %arg1: memref<5xi32, #tpu.memory_space<smem>>) -> (i32, i32, i32) {
    %0 = arith.index_cast %arg0 : i32 to index
    %1 = memref.load %arg1[%0] : memref<5xi32, #tpu.memory_space<smem>>
    %c0_i32 = arith.constant 0 : i32
    %c0_i32_0 = arith.constant 0 : i32
    %c0_i32_1 = arith.constant 0 : i32
    return %1, %c0_i32, %c0_i32_0 : i32, i32, i32
  }
  func.func @transform_3(%arg0: i32, %arg1: memref<5xi32, #tpu.memory_space<smem>>) -> (i32, i32, i32) {
    %0 = arith.index_cast %arg0 : i32 to index
    %1 = memref.load %arg1[%0] : memref<5xi32, #tpu.memory_space<smem>>
    %c0_i32 = arith.constant 0 : i32
    %c0_i32_0 = arith.constant 0 : i32
    %c0_i32_1 = arith.constant 0 : i32
    return %1, %c0_i32, %c0_i32_0 : i32, i32, i32
  }
  func.func @transform_4(%arg0: i32, %arg1: memref<5xi32, #tpu.memory_space<smem>>) -> (i32, i32, i32) {
    %0 = arith.index_cast %arg0 : i32 to index
    %1 = memref.load %arg1[%0] : memref<5xi32, #tpu.memory_space<smem>>
    %c0_i32 = arith.constant 0 : i32
    %c0_i32_0 = arith.constant 0 : i32
    %c0_i32_1 = arith.constant 0 : i32
    return %1, %c0_i32, %c0_i32_0 : i32, i32, i32
  }
  func.func @transform_5(%arg0: i32, %arg1: memref<5xi32, #tpu.memory_space<smem>>) -> (i32, i32) {
    %c0_i32 = arith.constant 0 : i32
    %c0_i32_0 = arith.constant 0 : i32
    return %arg0, %c0_i32 : i32, i32
  }
}

</mosaic_0001>

<bundles_post_ra>
// kernel: tpu_custom_call.1
= control target key start
LH: loop header
LB: loop body
LE: loop exit
PB: predicated region body
PF: predicated region fallthrough
CT: control target
= control target key end

     0   :  { %s1232_s0 = inlined_call_operand.vmem [shape: s32[5], index: 0, kind: input, shape index: {}]   ;;  %s1233_s1 = inlined_call_operand.vmem [shape: bf16[640,8], index: 1, kind: input, shape index: {}]   ;;  %s1234_s2 = inlined_call_operand.vmem [shape: bf16[2,8,8], index: 2, kind: input, shape index: {}]   ;;  %s1235_s3 = inlined_call_operand.vmem [shape: f32[2,1,8], index: 3, kind: input, shape index: {}]   ;;  %s1236_s4 = inlined_call_operand.vmem [shape: bf16[2,8,128], index: 4, kind: input, shape index: {}]   ;;  %s1237_s5 = inlined_call_operand.vmem [shape: f32[2,1,128], index: 5, kind: input, shape index: {}]   ;;  %s1238_s6 = inlined_call_operand.hbm [shape: f32[640,128], index: 6, kind: output, shape index: {}]  }
   0x1   :  { %s11_s23 = sshll.u32 %s1232_s0, 4  ;;  %s12_s23 = int_to_ptr.vmem [resolvable:$true] %s11_s23 }
   0x2   :  { %s951_s24 = scalar_lea.vmem %s12_s23, 16  ;;  %p956_p1 = scmp.lt.s32.totalorder %s12_s23, %s12_s23 }
   0x3   :  { %p952_p0 = scmp.ne.s32.totalorder %s12_s23, %s951_s24  ;;  %p957_p2 = scmp.lt.s32.totalorder %s951_s24, %s951_s24 }
   0x5   :  { %p958_p3 = por %p957_p2, %p956_p1 }
   0x7   :  { %p959_p4 = pnand %p958_p3, %p952_p0 }
   0x9   :  { %962 = shalt.err (!%p959_p4)  }
   0xa   :  { %s1029_s25 = smov [#allocation3]  }
   0xb   :  { %14 = dma.vmem_to_smem %s12_s23, 16, %s1029_s25, [#allocation2] }
   0xc   :  { %1007 = dma.done.wait [#allocation2], 16 }
   0xd   :  { %1008 = vsyncadd [#allocation2], 4294967280 }
   0xe   :  { %16 = sfence }
   0xf   :  { %17 = vsyncpa [#allocation5], 0 }
  0x10   :  { %19 = vsyncpa [#allocation5 + $0x1], 0  ;;  %s1071_s26 = smov 0   ;;  %s1073_s27 = smov 0  }
  0x11   :  { %s1075_s0 = smov 0   ;;  %s1077_s28 = smov 0  }
  0x12 LB: > { %s1092_s29 = sadd.s32 4294967295, %s1027_s28   ;;  %s804_s30 = sadd.s32 4294967294, %s1027_s28   ;;  %s1027_s28 = sphi %s1077_s28, %s1244_s28   ;;  %s1023_s0 = sphi %s1075_s0, %s1243_s0   ;;  %s1019_s27 = sphi %s1073_s27, %s1242_s27   ;;  %s1015_s26 = sphi %s1071_s26, %s1241_s26  }
  0x13   : > { %s1096_s7 = sadd.s32 1, %s1027_s28   ;;  %s170_s8 = sadd.s32 1, %s1023_s0 }
  0x14   : > { %s167_s9 = ssub.s32 %s1027_s28, %s1096_s7  ;;  %p180_p5 = scmp.ne.s32.totalorder %s1023_s0, %s1019_s27 }
  0x15   : > { %p168_p6 = scmp.eq.s32.totalorder %s167_s9, 0  ;;  %p181_p7 = scmp.eq.s32.totalorder %s1092_s29, 4 }
  0x16   : > { %p186_p8 = scmp.ne.s32.totalorder %s1019_s27, %s1015_s26  ;;  %p187_p9 = scmp.eq.s32.totalorder %s804_s30, 4 }
  0x17   : > { %s1107_s10 = scalar_select %p168_p6, %s1023_s0, %s170_s8  }
  0x18   : > { %p1109_p10 = por %p181_p7, %p180_p5  ;;  %p1113_p11 = por %p187_p9, %p186_p8 }
  0x19   : > { %p807_p12 = scmp.ge.s32.totalorder %s1027_s28, 1  ;;  %p248_p13 = scmp.lt.s32.totalorder %s1027_s28, 6 }
  0x1b   : > { %p249_p0 = pnand %p807_p12, %p248_p13 }
  0x1c   : > { %s300_s13 = sld [smem:[#allocation3 + %s1092_s29]] (!%p249_p0)  ;;  %s809_s14 = sshll.u32 (!%p249_p0), %s1092_s29, 4  ;;  %vm388_vm0 = vcmask (!%p249_p0), 64512   ;;  %vm413_vm1 = vcmask (!%p249_p0), 1043456  }
  0x1d   : > { %252 = sbr.rel (%p249_p0) target bundleno = 523 (0x20b), region = 40  ;;  %p295_p1 = scmp.lt.s32.totalorder (!%p249_p0), %s809_s14, 79 }
  0x1e   : > { %s311_s23 = sld [smem:[#allocation3 + %s1092_s29]] (!%p249_p0)  ;;  %s291_s17 = sand.u32 (!%p249_p0), 1, %s1019_s27  }
  0x1f   : > { %s306_s9 = sld [smem:[#allocation3 + %s1092_s29]] (!%p249_p0)  ;;  %s808_s21 = sshll.u32 (!%p249_p0), %s291_s17, 7 }
  0x20   : > { %s317_s16 = sld [smem:[#allocation3 + %s1092_s29]] (!%p249_p0) }
  0x22   : > { %p301_p2 = scmp.lt.s32.totalorder (!%p249_p0), %s300_s13, 1 }
  0x24   : > { %s1246_s14 = smov (!%p295_p1, %s809_s14), 79  ;;  %s1248_s13 = smov (!%p301_p2, %s300_s13), 1 }
  0x25   : > { %s810_s15 = sshll.u32 %s1246_s14, 2  ;;  %s811_s19 = sshll.u32 %s1248_s13, 2 }
  0x26   : > { %s298_s18 = scalar_lea.vmem %s1233_s1, %s810_s15  ;;  %s304_s22 = scalar_lea.vmem %s1234_s2, %s811_s19 }
  0x27   : > { %v943_v0 = vld [vmem:[%s298_s18] sm:$0xff]   ;;  %v944_v3 = vld [vmem:[%s298_s18 + $0x8] sm:$0xff]   ;;  %v945_v4 = vld [vmem:[%s298_s18 + $0x10] sm:$0xff]   ;;  %p312_p3 = scmp.lt.s32.totalorder %s311_s23, 1  ;;  %p307_p4 = scmp.lt.s32.totalorder %s306_s9, 1 }
  0x28   : > { %865 = vmatprep.mubr.msk.bf16.mxu0 %vm388_vm0, %v943_v0  ;;  %v340_v1 = vld [vmem:[%s304_s22] sm:$0xf]  ;;  %v946_v5 = vld [vmem:[%s298_s18 + $0x18] sm:$0xff]   ;;  %v948_v7 = vld [vmem:[%s298_s18 + $0x28] sm:$0xff]   ;;  %p318_p5 = scmp.lt.s32.totalorder %s317_s16, 1  ;;  %s1162_s22 = scalar_lea.vmem [#allocation4], %s808_s21 }
  0x29   : > { %899 = vmatprep.subr.msk.bf16.mxu0 %vm413_vm1, %v340_v1  ;;  %v415_v2 = vsel %vm413_vm1, %v340_v1, 0  ;;  %v947_v6 = vld [vmem:[%s298_s18 + $0x20] sm:$0xff]   ;;  %v949_v8 = vld [vmem:[%s298_s18 + $0x30] sm:$0xff]   ;;  %v950_v9 = vld [vmem:[%s298_s18 + $0x38] sm:$0xff]   ;;  %s1250_s23 = smov (!%p312_p3, %s311_s23), 1  ;;  %s1252_s9 = smov (!%p307_p4, %s306_s9), 1 }
  0x2a   : > { %864 = vmatpush3.bf16.msra.mxu0 %v415_v2  ;;  %s812_s24 = sshll.u32 %s1250_s23, 2  ;;  %s309_s15 = scalar_lea.vmem %s1235_s3, %s1252_s9 }
  0x2b   : > { %s315_s8 = scalar_lea.vmem %s1236_s4, %s812_s24  ;;  %v813_v12 = vld [vmem:[%s309_s15] ss:$0 sm:$0xff]  ;;  %s1254_s16 = smov (!%p318_p5, %s317_s16), 1 }
  0x2c   : > { %v538_v10 = vld [vmem:[%s315_s8] sm:$0xf]  ;;  %s320_s20 = scalar_lea.vmem %s1237_s5, %s1254_s16  ;;  %s844_s23 = sshll.u32 %s1092_s29, 11 }
  0x2d   : > { %866 = vmatmul.mubr.msk.bf16.vlgmr.msra.gmra.mrb[0].mxu0 %vm388_vm0, %v944_v3  ;;  %900 = vmatprep.subr.msk.bf16.mxu1 %vm413_vm1, %v538_v10  ;;  %v571_v11 = vsel %vm413_vm1, %v538_v10, 0  ;;  %s700_s24 = sshll.u32 %s1162_s22, 4  ;;  %s1182_s8 = scalar_lea.hbm %s1238_s6, %s844_s23  ;;  %s1184_s24 = int_to_ptr.vmem [resolvable:$true] %s700_s24 }
  0x2e   : > { %869 = vmatprep.mubr.msk.bf16.mxu0 %vm388_vm0, %v945_v4  ;;  %882 = vmatpush3.bf16.msra.mxu1 %v571_v11  ;;  %s1191_s29 = scalar_lea.sflag [#allocation5], %s291_s17  ;;  %s963_s9 = scalar_lea.vmem %s1184_s24, 2048 }
  0x2f   : > { %p964_p6 = scmp.ne.s32.totalorder %s1184_s24, %s963_s9  ;;  %s1030_s13 = smov [#allocation4]  }
  0x30   : > { %s967_s14 = sshll.u32 %s1030_s13, 4  ;;  %s968_s14 = int_to_ptr.vmem [resolvable:$false] %s967_s14 }
  0x31   : > { %p965_p7 = pnand %p964_p6, %p1109_p10  ;;  %s969_s15 = scalar_lea.vmem %s968_s14, 4096 }
  0x32   : > { %p970_p9 = scmp.lt.s32.totalorder %s1184_s24, %s968_s14  ;;  %p971_p12 = scmp.lt.s32.totalorder %s969_s15, %s963_s9 }
  0x33   : > { %p966_p8 = pneg %p965_p7 }
  0x34   : > { %p972_p13 = por %p971_p12, %p970_p9 }
  0x35   : > { %870 = vmatmul.mubr.msk.bf16.gmra.mrb[4].mxu0 %vm388_vm0, %v946_v5  ;;  %v830_v5 = vld [vmem:[%s320_s20] ss:$0 sm:$0xff] }
  0x36   : > { %873 = vmatprep.mubr.msk.bf16.mxu0 %vm388_vm0, %v947_v6  ;;  %p973_p0 = pnand %p972_p13, %p966_p8 }
  0x3d   : > { %874 = vmatmul.mubr.msk.bf16.gmra.mrb[8].mxu0 %vm388_vm0, %v948_v7 }
  0x3e   : > { %877 = vmatprep.mubr.msk.bf16.mxu0 %vm388_vm0, %v949_v8 }
  0x45   : > { %878 = vmatmul.mubr.msk.bf16.gmra.mrb[12].mxu0 %vm388_vm0, %v950_v9 }
 0x100   : > { %v867_v13 = vpop.f32.mrb[0].mxu0 }
 0x101   : > { %v460_v14 = vadd.f32 %v867_v13, %v813_v12  ;;  %v451_v15 = vpop.f32.mrb[1].mxu0 }
 0x102   : > { %v452_v16 = vadd.f32 %v813_v12, %v451_v15  ;;  %v868_v17 = vpop.f32.mrb[2].mxu0 }
 0x103   : > { %v463_v18 = vadd.f32 %v868_v17, %v813_v12  ;;  %v454_v19 = vpop.f32.mrb[3].mxu0  ;;  %v516_v21 = vmax.f32 %v460_v14, 0.0 }
 0x104   : > { %v455_v20 = vadd.f32 %v813_v12, %v454_v19  ;;  %v514_v23 = vmax.f32 %v452_v16, 0.0 }
 0x105   : > { %v517_v22 = vmax.f32 %v463_v18, 0.0 }
 0x106   : > { %v515_v24 = vmax.f32 %v455_v20, 0.0 }
 0x107   : > { %v531_v25 = vpack.c.bf16 %v517_v22, %v516_v21 }
 0x108   : > { %v871_v26 = vpop.f32.mrb[4].mxu0  ;;  %v530_v27 = vpack.c.bf16 %v515_v24, %v514_v23 }
 0x109   : > { %v476_v28 = vadd.f32 %v871_v26, %v813_v12  ;;  %v467_v29 = vpop.f32.mrb[5].mxu0 }
 0x10a   : > { %v468_v30 = vadd.f32 %v813_v12, %v467_v29  ;;  %v872_v31 = vpop.f32.mrb[6].mxu0  ;;  %883 = vmatprep.mubr.msk.bf16.mxu1 %vm388_vm0, %v530_v27 }
 0x10b   : > { %v479_v32 = vadd.f32 %v872_v31, %v813_v12  ;;  %v470_v33 = vpop.f32.mrb[7].mxu0  ;;  %884 = vmatmul.mubr.msk.bf16.vlgmr.msra.gmra.mrb[0].mxu1 %vm388_vm0, %v531_v25  ;;  %v520_v35 = vmax.f32 %v476_v28, 0.0 }
 0x10c   : > { %v471_v34 = vadd.f32 %v813_v12, %v470_v33  ;;  %v518_v37 = vmax.f32 %v468_v30, 0.0 }
 0x10d   : > { %v521_v36 = vmax.f32 %v479_v32, 0.0 }
 0x10e   : > { %v519_v38 = vmax.f32 %v471_v34, 0.0 }
 0x10f   : > { %v533_v39 = vpack.c.bf16 %v521_v36, %v520_v35 }
 0x110   : > { %v532_v40 = vpack.c.bf16 %v519_v38, %v518_v37  ;;  %v875_v41 = vpop.f32.mrb[8].mxu0 }
 0x111   : > { %v492_v42 = vadd.f32 %v875_v41, %v813_v12  ;;  %v483_v43 = vpop.f32.mrb[9].mxu0 }
 0x112   : > { %v484_v44 = vadd.f32 %v813_v12, %v483_v43  ;;  %v876_v45 = vpop.f32.mrb[10].mxu0  ;;  %887 = vmatprep.mubr.msk.bf16.mxu1 %vm388_vm0, %v532_v40 }
 0x113   : > { %v495_v46 = vadd.f32 %v876_v45, %v813_v12  ;;  %v486_v47 = vpop.f32.mrb[11].mxu0  ;;  %888 = vmatmul.mubr.msk.bf16.gmra.mrb[4].mxu1 %vm388_vm0, %v533_v39  ;;  %v524_v49 = vmax.f32 %v492_v42, 0.0 }
 0x114   : > { %v487_v48 = vadd.f32 %v813_v12, %v486_v47  ;;  %v522_v51 = vmax.f32 %v484_v44, 0.0 }
 0x115   : > { %v525_v50 = vmax.f32 %v495_v46, 0.0 }
 0x116   : > { %v523_v52 = vmax.f32 %v487_v48, 0.0 }
 0x117   : > { %v535_v53 = vpack.c.bf16 %v525_v50, %v524_v49 }
 0x118   : > { %v534_v54 = vpack.c.bf16 %v523_v52, %v522_v51  ;;  %v879_v55 = vpop.f32.mrb[12].mxu0 }
 0x119   : > { %v508_v56 = vadd.f32 %v879_v55, %v813_v12  ;;  %v499_v57 = vpop.f32.mrb[13].mxu0 }
 0x11a   : > { %v500_v58 = vadd.f32 %v813_v12, %v499_v57  ;;  %v880_v59 = vpop.f32.mrb[14].mxu0  ;;  %891 = vmatprep.mubr.msk.bf16.mxu1 %vm388_vm0, %v534_v54 }
 0x11b   : > { %v511_v60 = vadd.f32 %v880_v59, %v813_v12  ;;  %v502_v61 = vpop.f32.mrb[15].mxu0  ;;  %892 = vmatmul.mubr.msk.bf16.gmra.mrb[8].mxu1 %vm388_vm0, %v535_v53  ;;  %v528_v63 = vmax.f32 %v508_v56, 0.0 }
 0x11c   : > { %v503_v62 = vadd.f32 %v813_v12, %v502_v61  ;;  %v526_v1 = vmax.f32 %v500_v58, 0.0 }
 0x11d   : > { %v529_v0 = vmax.f32 %v511_v60, 0.0 }
 0x11e   : > { %v527_v2 = vmax.f32 %v503_v62, 0.0 }
 0x11f   : > { %v537_v3 = vpack.c.bf16 %v529_v0, %v528_v63 }
 0x120   : > { %v536_v4 = vpack.c.bf16 %v527_v2, %v526_v1 }
 0x122   : > { %895 = vmatprep.mubr.msk.bf16.mxu1 %vm388_vm0, %v536_v4 }
 0x123   : > { %896 = vmatmul.mubr.msk.bf16.gmra.mrb[12].mxu1 %vm388_vm0, %v537_v3 }
 0x1de   : > { %v885_v6 = vpop.f32.mrb[0].mxu1 }
 0x1df   : > { %v616_v7 = vadd.f32 %v885_v6, %v830_v5  ;;  %v607_v8 = vpop.f32.mrb[1].mxu1 }
 0x1e0   : > { %v608_v9 = vadd.f32 %v830_v5, %v607_v8  ;;  %v886_v10 = vpop.f32.mrb[2].mxu1 }
 0x1e1   : > { %672 = vst [vmem:[%s1162_s22 + $0x10] sm:$0xff] %v616_v7  ;;  %v619_v11 = vadd.f32 %v886_v10, %v830_v5  ;;  %v610_v12 = vpop.f32.mrb[3].mxu1 }
 0x1e2   : > { %670 = vst [vmem:[%s1162_s22] sm:$0xff] %v608_v9  ;;  %v611_v13 = vadd.f32 %v830_v5, %v610_v12 }
 0x1e3   : > { %673 = vst [vmem:[%s1162_s22 + $0x18] sm:$0xff] %v619_v11 }
 0x1e4   : > { %671 = vst [vmem:[%s1162_s22 + $0x8] sm:$0xff] %v611_v13 }
 0x1e6   : > { %v889_v14 = vpop.f32.mrb[4].mxu1 }
 0x1e7   : > { %v632_v15 = vadd.f32 %v889_v14, %v830_v5  ;;  %v623_v16 = vpop.f32.mrb[5].mxu1 }
 0x1e8   : > { %v624_v17 = vadd.f32 %v830_v5, %v623_v16  ;;  %v890_v18 = vpop.f32.mrb[6].mxu1 }
 0x1e9   : > { %676 = vst [vmem:[%s1162_s22 + $0x30] sm:$0xff] %v632_v15  ;;  %v635_v19 = vadd.f32 %v890_v18, %v830_v5  ;;  %v626_v20 = vpop.f32.mrb[7].mxu1 }
 0x1ea   : > { %674 = vst [vmem:[%s1162_s22 + $0x20] sm:$0xff] %v624_v17  ;;  %v627_v21 = vadd.f32 %v830_v5, %v626_v20 }
 0x1eb   : > { %677 = vst [vmem:[%s1162_s22 + $0x38] sm:$0xff] %v635_v19 }
 0x1ec   : > { %675 = vst [vmem:[%s1162_s22 + $0x28] sm:$0xff] %v627_v21 }
 0x1ee   : > { %v893_v22 = vpop.f32.mrb[8].mxu1 }
 0x1ef   : > { %v648_v23 = vadd.f32 %v893_v22, %v830_v5  ;;  %v639_v24 = vpop.f32.mrb[9].mxu1 }
 0x1f0   : > { %v640_v25 = vadd.f32 %v830_v5, %v639_v24  ;;  %v894_v26 = vpop.f32.mrb[10].mxu1 }
 0x1f1   : > { %680 = vst [vmem:[%s1162_s22 + $0x50] sm:$0xff] %v648_v23  ;;  %v651_v27 = vadd.f32 %v894_v26, %v830_v5  ;;  %v642_v28 = vpop.f32.mrb[11].mxu1 }
 0x1f2   : > { %678 = vst [vmem:[%s1162_s22 + $0x40] sm:$0xff] %v640_v25  ;;  %v643_v29 = vadd.f32 %v830_v5, %v642_v28 }
 0x1f3   : > { %681 = vst [vmem:[%s1162_s22 + $0x58] sm:$0xff] %v651_v27 }
 0x1f4   : > { %679 = vst [vmem:[%s1162_s22 + $0x48] sm:$0xff] %v643_v29 }
 0x1f6   : > { %v897_v30 = vpop.f32.mrb[12].mxu1 }
 0x1f7   : > { %v664_v31 = vadd.f32 %v897_v30, %v830_v5  ;;  %v655_v32 = vpop.f32.mrb[13].mxu1 }
 0x1f8   : > { %v656_v33 = vadd.f32 %v830_v5, %v655_v32  ;;  %v898_v34 = vpop.f32.mrb[14].mxu1 }
 0x1f9   : > { %684 = vst [vmem:[%s1162_s22 + $0x70] sm:$0xff] %v664_v31  ;;  %v667_v35 = vadd.f32 %v898_v34, %v830_v5  ;;  %v658_v36 = vpop.f32.mrb[15].mxu1 }
 0x1fa   : > { %682 = vst [vmem:[%s1162_s22 + $0x60] sm:$0xff] %v656_v33  ;;  %v659_v37 = vadd.f32 %v830_v5, %v658_v36 }
 0x1fb   : > { %685 = vst [vmem:[%s1162_s22 + $0x78] sm:$0xff] %v667_v35 }
 0x1fc   : > { %683 = vst [vmem:[%s1162_s22 + $0x68] sm:$0xff] %v659_v37 }
 0x1fd   : > { %976 = shalt.err (!%p973_p0)
}
 0x1fe   : > { %s977_s16 = scalar_lea.hbm %s1182_s8, 2048  ;;  %s981_s19 = scalar_lea.hbm %s1238_s6, 10240 }
 0x1ff   : > { %p978_p1 = scmp.ne.s32.totalorder %s1182_s8, %s977_s16  ;;  %p982_p4 = scmp.lt.u32.totalorder %s1182_s8, %s1238_s6 }
 0x200   : > { %p983_p5 = scmp.lt.u32.totalorder %s981_s19, %s977_s16  ;;  %p985_p7 = scmp.lt.u32.totalorder %s977_s16, %s1182_s8 }
 0x201   : > { %p979_p2 = pnand %p978_p1, %p1109_p10 }
 0x202   : > { %p984_p6 = por %p983_p5, %p982_p4 }
 0x203   : > { %p980_p3 = pneg %p979_p2 }
 0x204   : > { %p986_p8 = por %p985_p7, %p984_p6 }
 0x206   : > { %p987_p9 = pnand %p986_p8, %p980_p3 }
 0x208   : > { %990 = shalt.err (!%p987_p9)
}
 0x209   : > { %s1031_s22 = smov 128   ;;  %s1032_s23 = smov 8  }
 0x20a   : > { %901 = dma.vmem_to_hbm [thread:$0]  (%p1109_p10), %s1184_s24, 2048, %s1182_s8, %s1191_s29, %s1031_s22, %s1031_s22, %s1032_s23  }
 0x20b PF: > { %p907_p12 = scmp.ge.s32.totalorder %s1027_s28, 2  ;;  %s715_s25 = sand.u32 1, %s1015_s26  }
 0x20c   : > { %s716_s30 = scalar_lea.sflag [#allocation5], %s715_s25 }
 0x20d   : > { %p904_p13 = pnand %p907_p12, %p1113_p11 }
 0x20f   : > { %1010 = dma.done.wait (!%p904_p13), %s716_s30, 2048  }
 0x210   : > { %1012 = vsyncadd (!%p904_p13), %s716_s30, 4294965248  ;;  %p22_p0 = scmp.ge.s32.totalorder %s1096_s7, 7   ;;  %s1241_s26 = smov %s1019_s27 }
 0x211   : > { %s1242_s27 = smov %s1023_s0  ;;  %s1243_s0 = smov %s1107_s10 }
 0x212   : > { %s1244_s28 = smov %s1096_s7  ;;  %24 = sbr.rel (!%p22_p0) target bundleno = 18 (0x12), region = 87 }
 0x219   :  { %721 = vsyncpa [#allocation5], 1 }
 0x21a   :  { %723 = vsyncpa [#allocation5 + $0x1], 1 }

</bundles_post_ra>
